<compile_context>
chip_gen: v6e
topology: v6e:2x2x1
jax: 0.10.0
libtpu: 0.0.40
codegen_flags: <defaults>
</compile_context>

<pallas_src>
import jax
import jax.numpy as jnp
import numpy as np
from jax.experimental import pallas as pl
from jax.experimental.pallas import tpu as pltpu


def ctg_kernel(x_ref, a_ref, w_ref, o_ref):
    # x_ref: (d_cat+1, T*V)   channel-major slab [x chans ; att chans ; ones]
    # a_ref: (T*V, T*V)       block-diagonal adjacency (block t == A[t])
    # w_ref: (C_out, d_cat+1) fused (embedding ∘ 1x1 conv) weight, bias column last
    # o_ref: (C_out, T*V)     lane-dense output
    conv = jnp.dot(w_ref[...], x_ref[...],
                   preferred_element_type=jnp.float32)          # (C_out, T*V)
    o_ref[...] = jnp.dot(conv, a_ref[...],
                         preferred_element_type=jnp.float32)     # (C_out, T*V)


def precompute_fused_weight(w_emb, b_emb, w_conv, b_conv):
    """ONE-TIME (pure function of the parameters): fuse Linear(10,C_emb) with the
    1x1 Conv2d(C_emb,C_out) and fold the fused bias in as an extra weight column.

    w_emb: (10, C_emb)  (transpose of torch Linear.weight)
    b_emb: (C_emb,)
    w_conv:(C_emb, C_out) (torch Conv2d weight (C_out,C_emb,1,1) squeezed+transposed)
    b_conv:(C_out,)
    Returns w_aug_t: (C_out, 11)
    """
    w_fused = w_emb @ w_conv                       # (10, C_out)
    b_fused = b_emb @ w_conv + b_conv              # (C_out,)
    return jnp.concatenate([w_fused, b_fused[None, :]], axis=0).T.astype(jnp.float32)


def precompute_block_adjacency(A):
    """ONE-TIME (A is a fixed buffer in ST-GCN): blk[t*V+v, t*V+w] = A[t, v, w].

    NOTE: (T*V)^2 f32 is fine at TV=O(128-512); for much larger graphs switch to
    a grid over t instead of the dense block-diagonal (VMEM + zero-MAC waste).
    """
    T, V, _ = A.shape
    TV = T * V
    eye_t = jnp.eye(T, dtype=A.dtype)
    return (eye_t[:, None, :, None] * A[:, :, None, :]).reshape(TV, TV).astype(jnp.float32)


@jax.jit
def ctg_forward(x, seq_scene_att, a_blk, w_aug_t):
    """Hot-path forward. x: (1,C_in,T,V); seq_scene_att: (1,T,V,C_att);
    a_blk/w_aug_t from the precompute_* helpers. Returns (1, C_out, T, V)."""
    N, C_in, T, V = x.shape
    assert N == 1
    TV = T * V
    C_out, d_aug = w_aug_t.shape
    d_cat = d_aug - 1
    C_att = seq_scene_att.shape[-1]
    assert C_in + C_att == d_cat, "embedding expects C_in + C_att input channels"
    assert a_blk.shape == (TV, TV)

    # Per-call glue (fuses under jit into one tiny HLO):
    #   channel-major slab (d_cat+1, T*V): [x channels ; att channels ; ones(bias)]
    # TODO(synk): the att transpose+concat could also be folded into the kernel as a
    # second tiny matmul + in-kernel XLU transpose; kept in the jitted wrapper for
    # lowering robustness (it is a single ~5 KiB fusion here).
    x_cm = x.reshape(C_in, TV)                                            # pure reshape
    att_cm = jnp.transpose(seq_scene_att[0], (2, 0, 1)).reshape(C_att, TV)
    ones_row = jnp.ones((1, TV), jnp.float32)
    xaug = jnp.concatenate([x_cm.astype(jnp.float32),
                            att_cm.astype(jnp.float32),
                            ones_row], axis=0)                            # (d_cat+1, TV)

    vmem = pl.BlockSpec(memory_space=pltpu.MemorySpace.VMEM)
    cost = pl.CostEstimate(
        flops=2 * C_out * TV * (d_aug + TV),
        transcendentals=0,
        bytes_accessed=4 * (d_aug * TV + TV * TV + C_out * d_aug + C_out * TV),
    )
    out_cm = pl.pallas_call(
        ctg_kernel,
        out_shape=jax.ShapeDtypeStruct((C_out, TV), jnp.float32),
        in_specs=[vmem, vmem, vmem],
        out_specs=vmem,
        cost_estimate=cost,
    )(xaug, a_blk, w_aug_t)

    # (C_out, T*V) -> (1, C_out, T, V): pure reshape, no transpose needed
    return out_cm.reshape(1, C_out, T, V)


def conv_temporal_graphical(x, A, seq_scene_att, w_emb, b_emb, w_conv, b_conv):
    """Convenience one-shot API matching the torch module's forward signature.
    For repeated calls, run the precompute_* helpers once and call ctg_forward."""
    assert A.shape[0] == x.shape[2]            # kernel_size == T, required by einsum
    w_aug_t = precompute_fused_weight(w_emb, b_emb, w_conv, b_conv)
    a_blk = precompute_block_adjacency(A)
    gcn = ctg_forward(x, seq_scene_att, a_blk, w_aug_t)
    return gcn, A


def _reference(x, A, att, w_emb, b_emb, w_conv, b_conv):
    # pure-JAX reference mirroring the torch forward (un-fused weights)
    N, C_in, T, V = x.shape
    xc = jnp.concatenate([jnp.transpose(x, (0, 2, 3, 1)), att], axis=3)  # (1,T,V,10)
    emb = xc.reshape(-1, xc.shape[-1]) @ w_emb + b_emb                   # (T*V, C_emb)
    emb = emb.reshape(1, T, V, -1)
    ug = jnp.transpose(emb, (0, 3, 1, 2))                                # (1,C_emb,T,V)
    conv = jnp.einsum('nctv,co->notv', ug, w_conv) + b_conv[None, :, None, None]
    return jnp.einsum('nctv,tvw->nctw', conv, A)


if __name__ == "__main__":
    key = jax.random.PRNGKey(0)
    k1, k2, k3, k4, k5, k6, k7 = jax.random.split(key, 7)

    # shapes: N=1, C_in=2 (trajectory xy), T=8 frames, V=16 vertices, C_att=8 (SAM bottleneck)
    N, C_in, T, V, C_att = 1, 2, 8, 16, 8
    C_emb, C_out = 5, 5            # embedding Linear(10, 5); Conv2d(5, 5, (1,1))

    x = jax.random.normal(k1, (N, C_in, T, V), dtype=jnp.float32)
    A = jax.random.normal(k2, (T, V, V), dtype=jnp.float32)
    att = jax.random.normal(k3, (N, T, V, C_att), dtype=jnp.float32)

    # deterministic parameter init (synthetic weights, uniform like torch defaults)
    w_emb = jax.random.uniform(k4, (C_in + C_att, C_emb), jnp.float32, -0.3, 0.3)
    b_emb = jax.random.uniform(k5, (C_emb,), jnp.float32, -0.3, 0.3)
    w_conv = jax.random.uniform(k6, (C_emb, C_out), jnp.float32, -0.4, 0.4)
    b_conv = jax.random.uniform(k7, (C_out,), jnp.float32, -0.4, 0.4)

    # --- hoisted one-time precompute (pure functions of params / fixed A) -----
    w_aug_t = jax.block_until_ready(precompute_fused_weight(w_emb, b_emb, w_conv, b_conv))
    a_blk = jax.block_until_ready(precompute_block_adjacency(A))

    # --- hot path: single jitted forward wrapping the Pallas kernel ----------
    gcn = ctg_forward(x, att, a_blk, w_aug_t)
    gcn = jax.block_until_ready(gcn)

    ref = _reference(x, A, att, w_emb, b_emb, w_conv, b_conv)
    # fused weights / folded bias change only the f32 rounding order vs. the reference
    np.testing.assert_allclose(np.asarray(gcn), np.asarray(ref), rtol=1e-5, atol=1e-4)
    assert gcn.shape == (N, C_out, T, V)

    # convenience API (also returns A, matching the torch module)
    gcn2, A_out = conv_temporal_graphical(x, A, att, w_emb, b_emb, w_conv, b_conv)
    gcn2 = jax.block_until_ready(gcn2)
    np.testing.assert_allclose(np.asarray(gcn2), np.asarray(ref), rtol=1e-5, atol=1e-4)
    assert A_out.shape == A.shape

    print("KERNEL_OK")
</pallas_src>

<mosaic_0001>
module attributes {stable_mosaic.version = 11 : i64} {
  func.func @ctg_kernel(%arg0: memref<11x128xf32, #tpu.memory_space<vmem>>, %arg1: memref<128x128xf32, #tpu.memory_space<vmem>>, %arg2: memref<5x11xf32, #tpu.memory_space<vmem>>, %arg3: memref<5x128xf32, #tpu.memory_space<vmem>>) attributes {dimension_semantics = [], scalar_prefetch = 0 : i64, scratch_operands = 0 : i64, tpu.core_type = #tpu.core_type<tc>} {
    %c0 = arith.constant 0 : index
    %c0_0 = arith.constant 0 : index
    %0 = vector.load %arg2[%c0, %c0_0] : memref<5x11xf32, #tpu.memory_space<vmem>>, vector<5x11xf32>
    %c0_1 = arith.constant 0 : index
    %c0_2 = arith.constant 0 : index
    %1 = vector.load %arg0[%c0_1, %c0_2] : memref<11x128xf32, #tpu.memory_space<vmem>>, vector<11x128xf32>
    %cst = arith.constant dense<0.000000e+00> : vector<5x128xf32>
    %2 = tpu.matmul %0, %1, %cst {dimension_numbers = #tpu.dot_dimension_numbers<[1], [0], [0], [1], [0, 0, 1, 1], [], []>} : vector<5x11xf32>, vector<11x128xf32>, vector<5x128xf32> -> vector<5x128xf32>
    %c0_3 = arith.constant 0 : index
    %c0_4 = arith.constant 0 : index
    %3 = vector.load %arg1[%c0_3, %c0_4] : memref<128x128xf32, #tpu.memory_space<vmem>>, vector<128x128xf32>
    %cst_5 = arith.constant dense<0.000000e+00> : vector<5x128xf32>
    %4 = tpu.matmul %2, %3, %cst_5 {dimension_numbers = #tpu.dot_dimension_numbers<[1], [0], [0], [1], [0, 0, 1, 1], [], []>} : vector<5x128xf32>, vector<128x128xf32>, vector<5x128xf32> -> vector<5x128xf32>
    %c0_6 = arith.constant 0 : index
    %c0_7 = arith.constant 0 : index
    %5 = vector.load %arg3[%c0_6, %c0_7] : memref<5x128xf32, #tpu.memory_space<vmem>>, vector<5x128xf32>
    tpu.vector_store %arg3[%c0_6, %c0_7], %4 {strides = array<i32>} : memref<5x128xf32, #tpu.memory_space<vmem>>, vector<5x128xf32>,
    return
  }
}

</mosaic_0001>

<bundles_post_ra>
// kernel: ctg_forward.1
= control target key start
LH: loop header
LB: loop body
LE: loop exit
PB: predicated region body
PF: predicated region fallthrough
CT: control target
= control target key end

     0   :  { %vm21_vm0 = vcmask 1042432   ;;  %v252_v0 = vmov 0.0   ;;  %vm253_vm1 = vmmov 0   ;;  %vm17_vm2 = vcmask 89088   ;;  %s336_s0 = inlined_call_operand.vmem [shape: f32[11,128], index: 0, kind: input, shape index: {}]   ;;  %s337_s2 = inlined_call_operand.vmem [shape: f32[5,11], index: 2, kind: input, shape index: {}]   ;;  %s338_s1 = inlined_call_operand.vmem [shape: f32[128,128], index: 1, kind: input, shape index: {}]   ;;  %s339_s3 = inlined_call_operand.vmem [shape: f32[5,128], index: 3, kind: output, shape index: {}]  }
   0x1   :  { %208 = vmatprep.subr.mxu0 %v252_v0  ;;  %v16_v1 = vld [vmem:[%s336_s0 + $0x8] sm:$0x7]  ;;  %v15_v2 = vld [vmem:[%s336_s0] sm:$0xff]  ;;  %212 = vmatprep.mubr.msk.f32.mxu0 %vm253_vm1, %v252_v0  ;;  %v110_v4 = vld [vmem:[%s338_s1 + $0x78] sm:$0xff] }
   0x2   :  { %209 = vmatpush3.msk.msra.mxu0 %vm21_vm0, %v16_v1  ;;  %v14_v3 = vld [vmem:[%s337_s2] sm:$0x1f]  ;;  %215 = vmatprep.subr.mxu1 %v252_v0  ;;  %v109_v5 = vld [vmem:[%s338_s1 + $0x70] sm:$0xff]  ;;  %v108_v6 = vld [vmem:[%s338_s1 + $0x68] sm:$0xff] }
   0x3   :  { %210 = vmatprep.subr.mxu0 %v252_v0  ;;  %216 = vmatpush3.msra.mxu1 %v110_v4  ;;  %v107_v7 = vld [vmem:[%s338_s1 + $0x60] sm:$0xff]  ;;  %v106_v8 = vld [vmem:[%s338_s1 + $0x58] sm:$0xff]  ;;  %v105_v9 = vld [vmem:[%s338_s1 + $0x50] sm:$0xff] }
   0x4   :  { %211 = vmatpush3.msra.mxu0 %v15_v2  ;;  %217 = vmatprep.subr.mxu1 %v252_v0  ;;  %v104_v10 = vld [vmem:[%s338_s1 + $0x48] sm:$0xff]  ;;  %v103_v11 = vld [vmem:[%s338_s1 + $0x40] sm:$0xff]  ;;  %v102_v12 = vld [vmem:[%s338_s1 + $0x38] sm:$0xff] }
   0x5   :  { %213 = vmatmul.mubr.msk.f32.vlgmr.msra.gmra.mxu0 %vm17_vm2, %v14_v3  ;;  %218 = vmatpush3.msra.mxu1 %v109_v5  ;;  %v101_v13 = vld [vmem:[%s338_s1 + $0x30] sm:$0xff]  ;;  %v100_v14 = vld [vmem:[%s338_s1 + $0x28] sm:$0xff]  ;;  %v99_v15 = vld [vmem:[%s338_s1 + $0x20] sm:$0xff] }
   0x6   :  { %219 = vmatprep.subr.mxu1 %v252_v0  ;;  %247 = vmatprep.mubr.msk.f32.mxu1 %vm253_vm1, %v252_v0  ;;  %v98_v16 = vld [vmem:[%s338_s1 + $0x18] sm:$0xff]  ;;  %v97_v17 = vld [vmem:[%s338_s1 + $0x10] sm:$0xff]  ;;  %v96_v18 = vld [vmem:[%s338_s1 + $0x8] sm:$0xff] }
   0x7   :  { %220 = vmatpush3.msra.mxu1 %v108_v6  ;;  %v95_v19 = vld [vmem:[%s338_s1] sm:$0xff] }
   0x8   :  { %221 = vmatprep.subr.mxu1 %v252_v0 }
   0x9   :  { %222 = vmatpush3.msra.mxu1 %v107_v7 }
   0xa   :  { %223 = vmatprep.subr.mxu1 %v252_v0 }
   0xb   :  { %224 = vmatpush3.msra.mxu1 %v106_v8 }
   0xc   :  { %225 = vmatprep.subr.mxu1 %v252_v0 }
   0xd   :  { %226 = vmatpush3.msra.mxu1 %v105_v9 }
   0xe   :  { %227 = vmatprep.subr.mxu1 %v252_v0 }
   0xf   :  { %228 = vmatpush3.msra.mxu1 %v104_v10 }
  0x10   :  { %229 = vmatprep.subr.mxu1 %v252_v0 }
  0x11   :  { %230 = vmatpush3.msra.mxu1 %v103_v11 }
  0x12   :  { %231 = vmatprep.subr.mxu1 %v252_v0 }
  0x13   :  { %232 = vmatpush3.msra.mxu1 %v102_v12 }
  0x14   :  { %233 = vmatprep.subr.mxu1 %v252_v0 }
  0x15   :  { %234 = vmatpush3.msra.mxu1 %v101_v13 }
  0x16   :  { %235 = vmatprep.subr.mxu1 %v252_v0 }
  0x17   :  { %236 = vmatpush3.msra.mxu1 %v100_v14 }
  0x18   :  { %237 = vmatprep.subr.mxu1 %v252_v0 }
  0x19   :  { %238 = vmatpush3.msra.mxu1 %v99_v15 }
  0x1a   :  { %239 = vmatprep.subr.mxu1 %v252_v0 }
  0x1b   :  { %240 = vmatpush3.msra.mxu1 %v98_v16 }
  0x1c   :  { %241 = vmatprep.subr.mxu1 %v252_v0 }
  0x1d   :  { %242 = vmatpush3.msra.mxu1 %v97_v17 }
  0x1e   :  { %243 = vmatprep.subr.mxu1 %v252_v0 }
  0x1f   :  { %244 = vmatpush3.msra.mxu1 %v96_v18 }
  0x20   :  { %245 = vmatprep.subr.mxu1 %v252_v0 }
  0x21   :  { %246 = vmatpush3.msra.mxu1 %v95_v19 }
  0xc5   :  { %v91_v20 = vpop.f32.mrf.mxu0 }
  0xc6   :  { %248 = vmatmul.mubr.f32.vlgmr.msra.gmra.mxu1 %v91_v20 }
  0xc7   :  { %v214_v21 = vpop.f32.mrf.mxu0 }
 0x186   :  { %v177_v22 = vpop.f32.mrf.mxu1 }
 0x187   :  { %181 = vst [vmem:[%s339_s3] sm:$0x1f] %v177_v22 }
 0x188   :  { %v249_v23 = vpop.f32.mrf.mxu1 }

</bundles_post_ra>
